<compile_context>
chip_gen: v7x
topology: tpu7x:2x2x1
jax: 0.10.0
libtpu: 0.0.40
codegen_flags: <defaults>
</compile_context>

<pallas_src>
import functools

import jax
import jax.numpy as jnp
from jax.experimental import pallas as pl
from jax.experimental.pallas import tpu as pltpu


# ---------------------------------------------------------------------------
# Kernel bodies.
# ---------------------------------------------------------------------------

def _bn_kernel_cs(x_ref, scale_ref, bias_ref, o_ref, *, c_tile):
    """Channel-on-sublane layout.

    x_ref / o_ref : (c_tile, s_tile) tile of one batch element.
    scale_ref / bias_ref : full (C_pad, 1) f32 VMEM residents; slice out the
    rows belonging to this channel tile (offset is c_tile-aligned)."""
    c0 = pl.program_id(1) * c_tile
    if c_tile % 8 == 0:                      # static (trace-time) branch
        c0 = pl.multiple_of(c0, 8)
    scale = scale_ref[pl.ds(c0, c_tile), :]
    shift = bias_ref[pl.ds(c0, c_tile), :]
    x = x_ref[...].astype(jnp.float32)
    o_ref[...] = (x * scale + shift).astype(o_ref.dtype)


def _bn_kernel_flat(x_ref, scale_ref, bias_ref, o_ref):
    """Flattened (lane-dense) layout for small spatial planes.

    x_ref / o_ref : (n_tile, f_tile).
    scale_ref / bias_ref : (1, f_tile) f32, broadcast over the batch rows."""
    x = x_ref[...].astype(jnp.float32)
    o_ref[...] = (x * scale_ref[...] + bias_ref[...]).astype(o_ref.dtype)


# ---------------------------------------------------------------------------
# Tiling heuristics (all static Python, evaluated at trace time).
# ---------------------------------------------------------------------------

def _sublane_packing(dtype):
    """Rows per packed vreg: 8 for 4-byte, 16 for 2-byte, 32 for 1-byte dtypes."""
    itemsize = jnp.dtype(dtype).itemsize
    return max(8, 8 * (4 // max(1, itemsize)))


def _vmem_budget():
    """(vmem_limit_bytes, target_block_bytes) sized to this TPU generation."""
    try:
        cap = int(pltpu.get_tpu_info().vmem_capacity_bytes)
    except Exception:
        cap = 64 * 1024 * 1024          # conservative fallback (v7x-sized VMEM)
    cap = min(cap, 128 * 1024 * 1024)
    vmem_limit = cap // 2               # 64 MiB on v5e/v6e, 32 MiB on v7x
    # ~4 x block (in + out, double-buffered) must fit comfortably in the limit.
    target_block = max(2 * 1024 * 1024, vmem_limit // 8)   # 8 MiB / 4 MiB
    return vmem_limit, target_block


def _choose_cs_tiles(N, C, S, itemsize, packing, target):
    """Pick (c_tile, s_tile) for ~target-byte x blocks.

    s_tile: multiple of 128 (or full S).  c_tile: multiple of the dtype's
    sublane packing (or full C), preferring a divisor of C."""
    # Spatial tile: take full S when even `packing` rows of it fit the target.
    if S * itemsize * packing <= target:
        s_tile = S
    else:
        s_tile = max(128, ((target // (packing * itemsize)) // 128) * 128)
        s_tile = min(s_tile, (S // 128) * 128)
    # Channel tile: fill the remaining byte budget.
    rows = max(1, target // max(1, s_tile * itemsize))
    if rows >= C or C <= packing:
        c_tile = C
    else:
        c_tile = min(C, max(packing, (rows // packing) * packing))
        for cand in range(c_tile, packing - 1, -packing):
            if C % cand == 0:          # avoid a masked channel-tail tile
                c_tile = cand
                break
    # Megacore / pipeline: keep a few grid steps so v7x's 2 TCs both get work.
    while (N * pl.cdiv(C, c_tile) * pl.cdiv(S, s_tile) < 8
           and c_tile >= 2 * packing):
        c_tile = max(packing, (c_tile // 2) // packing * packing)
    return c_tile, s_tile


# ---------------------------------------------------------------------------
# pallas_call wrappers (two layouts).
# ---------------------------------------------------------------------------

def _bn_call_channels_spatial(x, scale_c, bias_c, N, C, S, itemsize, packing,
                              target, vmem_limit, donate_x):
    """Layout A: (N, C, S) blocks of (c_tile, s_tile); channels on sublanes,
    lane-dense spatial (S is a multiple of 128, or large)."""
    c_tile, s_tile = _choose_cs_tiles(N, C, S, itemsize, packing, target)
    n_c = pl.cdiv(C, c_tile)
    n_s = pl.cdiv(S, s_tile)
    c_pad = n_c * c_tile

    # Per-channel params, zero-padded so the in-kernel slice never goes OOB,
    # kept whole-array resident in VMEM (single DMA for the whole call).
    scale2 = jnp.pad(scale_c, (0, c_pad - C)).reshape(c_pad, 1)
    bias2 = jnp.pad(bias_c, (0, c_pad - C)).reshape(c_pad, 1)

    x3 = x.reshape(N, C, S)
    kernel = functools.partial(_bn_kernel_cs, c_tile=c_tile)
    out3 = pl.pallas_call(
        kernel,
        out_shape=jax.ShapeDtypeStruct((N, C, S), x.dtype),
        grid=(N, n_c, n_s),
        in_specs=[
            pl.BlockSpec((None, c_tile, s_tile), lambda n, c, s: (n, c, s)),
            pl.BlockSpec(memory_space=pltpu.MemorySpace.VMEM),   # scale (resident)
            pl.BlockSpec(memory_space=pltpu.MemorySpace.VMEM),   # bias  (resident)
        ],
        out_specs=pl.BlockSpec((None, c_tile, s_tile), lambda n, c, s: (n, c, s)),
        compiler_params=pltpu.CompilerParams(
            dimension_semantics=("parallel", "parallel", "parallel"),
            vmem_limit_bytes=vmem_limit,
        ),
        input_output_aliases=({0: 0} if donate_x else {}),
    )(x3, scale2, bias2)
    return out3


def _bn_call_flat(x, scale_c, bias_c, N, C, S, itemsize, packing,
                  target, vmem_limit, donate_x):
    """Layout B: small / lane-sparse planes (S % 128 != 0).  Flatten each image
    to (C*S,) so stores are lane-dense; params expanded once to (1, C*S)
    (O(one plane)) and reused across the batch."""
    F = C * S
    scale_f = jnp.broadcast_to(scale_c[:, None], (C, S)).reshape(1, F)
    bias_f = jnp.broadcast_to(bias_c[:, None], (C, S)).reshape(1, F)
    x2 = x.reshape(N, F)

    n_tile = N if N <= packing else packing
    if F <= 128 or F * itemsize * n_tile <= target:
        f_tile = F
    else:
        f_tile = max(128, ((target // (n_tile * itemsize)) // 128) * 128)
        f_tile = min(f_tile, (F // 128) * 128)
    n_f = pl.cdiv(F, f_tile)
    n_n = pl.cdiv(N, n_tile)

    out2 = pl.pallas_call(
        _bn_kernel_flat,
        out_shape=jax.ShapeDtypeStruct((N, F), x.dtype),
        # Flat-chunk OUTER, batch INNER: the params' block index is constant
        # across n, so their tiles are fetched once per chunk (no re-DMA).
        grid=(n_f, n_n),
        in_specs=[
            pl.BlockSpec((n_tile, f_tile), lambda f, n: (n, f)),
            pl.BlockSpec((1, f_tile), lambda f, n: (0, f)),
            pl.BlockSpec((1, f_tile), lambda f, n: (0, f)),
        ],
        out_specs=pl.BlockSpec((n_tile, f_tile), lambda f, n: (n, f)),
        compiler_params=pltpu.CompilerParams(
            dimension_semantics=("parallel", "parallel"),
            vmem_limit_bytes=vmem_limit,
        ),
        input_output_aliases=({0: 0} if donate_x else {}),
    )(x2, scale_f, bias_f)
    return out2


# ---------------------------------------------------------------------------
# Public entry point.
# ---------------------------------------------------------------------------

def frozen_batch_norm_2d(x, weight, bias, running_mean, running_var, eps=1e-5,
                         *, target_block_bytes=None, donate_x=False):
    """y = x * scale + (bias - running_mean * scale), scale = w*rsqrt(rv+eps).

    x is NCHW, any float dtype (math in f32, result cast to x.dtype).
    `target_block_bytes` overrides the auto (generation-aware) block size —
    mainly for testing.  `donate_x=True` aliases the output onto x's buffer."""
    N, C, H, W = x.shape
    S = H * W
    itemsize = jnp.dtype(x.dtype).itemsize
    packing = _sublane_packing(x.dtype)

    vmem_limit, auto_target = _vmem_budget()
    target = int(target_block_bytes) if target_block_bytes else auto_target

    # Tiny O(C) parameter fold, in f32 for accuracy (matches the PyTorch module).
    w32 = weight.astype(jnp.float32)
    rv32 = running_var.astype(jnp.float32)
    rm32 = running_mean.astype(jnp.float32)
    b32 = bias.astype(jnp.float32)
    scale_c = w32 * jax.lax.rsqrt(rv32 + eps)      # (C,)
    bias_c = b32 - rm32 * scale_c                  # (C,)

    # Lane-sparse small planes (7x7, 14x14, ...) -> flattened layout; otherwise
    # channels-on-sublanes with a lane-dense (multiple-of-128) spatial axis.
    use_flat = (S % 128 != 0) and (S <= 1024)
    if use_flat:
        out = _bn_call_flat(x, scale_c, bias_c, N, C, S, itemsize, packing,
                            target, vmem_limit, donate_x)
    else:
        out = _bn_call_channels_spatial(x, scale_c, bias_c, N, C, S, itemsize,
                                        packing, target, vmem_limit, donate_x)
    return out.reshape(N, C, H, W)


# ---------------------------------------------------------------------------
# Self-test.
# ---------------------------------------------------------------------------

if __name__ == "__main__":
    key = jax.random.PRNGKey(0)
    eps = 1e-5

    def reference(x, w, b, rm, rv):
        w4 = w.reshape(1, -1, 1, 1).astype(jnp.float32)
        b4 = b.reshape(1, -1, 1, 1).astype(jnp.float32)
        rv4 = rv.reshape(1, -1, 1, 1).astype(jnp.float32)
        rm4 = rm.reshape(1, -1, 1, 1).astype(jnp.float32)
        scale = w4 * jax.lax.rsqrt(rv4 + eps)
        y = x.astype(jnp.float32) * scale + (b4 - rm4 * scale)
        return y.astype(x.dtype)

    def make_case(k, N, C, H, W, dtype):
        kx, kw, kb, km, kv = jax.random.split(k, 5)
        x = jax.random.normal(kx, (N, C, H, W), dtype=jnp.float32).astype(dtype)
        w = jnp.ones((C,), jnp.float32) + 0.1 * jax.random.normal(kw, (C,))
        b = 0.1 * jax.random.normal(kb, (C,))
        rm = 0.1 * jax.random.normal(km, (C,))
        rv = jnp.ones((C,), jnp.float32) + 0.1 * jnp.abs(jax.random.normal(kv, (C,)))
        return x, w, b, rm, rv

    # 1) Primary case: NCHW (2, 4, 16, 16) f32.  S = 256 (lane-dense) ->
    #    channels-on-sublanes path, resident params.
    x, w, b, rm, rv = make_case(key, 2, 4, 16, 16, jnp.float32)
    out = jax.block_until_ready(frozen_batch_norm_2d(x, w, b, rm, rv, eps))
    assert out.shape == x.shape and out.dtype == x.dtype
    assert jnp.allclose(out, reference(x, w, b, rm, rv), atol=1e-5, rtol=1e-5)

    # 2) Small, non-128-multiple spatial (7x7) -> flattened lane-dense path.
    k2 = jax.random.fold_in(key, 1)
    x, w, b, rm, rv = make_case(k2, 2, 8, 7, 7, jnp.float32)
    out = jax.block_until_ready(frozen_batch_norm_2d(x, w, b, rm, rv, eps))
    assert out.shape == x.shape and out.dtype == x.dtype
    assert jnp.allclose(out, reference(x, w, b, rm, rv), atol=1e-5, rtol=1e-5)

    # 3) Force real tiling at a small shape (channel tail + spatial split +
    #    resident-param slicing) via a tiny block-byte target.
    k3 = jax.random.fold_in(key, 2)
    x, w, b, rm, rv = make_case(k3, 2, 20, 16, 24, jnp.float32)
    out = jax.block_until_ready(
        frozen_batch_norm_2d(x, w, b, rm, rv, eps, target_block_bytes=8 * 1024))
    assert out.shape == x.shape and out.dtype == x.dtype
    assert jnp.allclose(out, reference(x, w, b, rm, rv), atol=1e-5, rtol=1e-5)

    print("KERNEL_OK")
</pallas_src>

<mosaic_0001>
module attributes {stable_mosaic.version = 11 : i64} {
  func.func @_bn_kernel_cs(%arg0: i32, %arg1: i32, %arg2: i32, %arg3: memref<1x4x256xf32, #tpu.memory_space<vmem>>, %arg4: memref<4x1xf32, #tpu.memory_space<vmem>>, %arg5: memref<4x1xf32, #tpu.memory_space<vmem>>, %arg6: memref<1x4x256xf32, #tpu.memory_space<vmem>>) attributes {dimension_semantics = [#tpu.dimension_semantics<parallel>, #tpu.dimension_semantics<parallel>, #tpu.dimension_semantics<parallel>], iteration_bounds = array<i64: 2, 1, 1>, scalar_prefetch = 0 : i64, scratch_operands = 0 : i64, tpu.core_type = #tpu.core_type<tc>, window_params = [{transform_indices = @transform_0, window_bounds = array<i64: 1, 4, 256>}, {pipeline_mode = #tpu.pipeline_mode<synchronous>, transform_indices = @transform_1, window_bounds = array<i64: 4, 1>}, {pipeline_mode = #tpu.pipeline_mode<synchronous>, transform_indices = @transform_2, window_bounds = array<i64: 4, 1>}, {transform_indices = @transform_3, window_bounds = array<i64: 1, 4, 256>}]} {
    %c4_i32 = arith.constant 4 : i32
    %0 = arith.muli %arg1, %c4_i32 : i32
    %1 = arith.index_cast %0 : i32 to index
    %c0 = arith.constant 0 : index
    %2 = vector.load %arg4[%1, %c0] : memref<4x1xf32, #tpu.memory_space<vmem>>, vector<4x1xf32>
    %3 = arith.index_cast %0 : i32 to index
    %c0_0 = arith.constant 0 : index
    %4 = vector.load %arg5[%3, %c0_0] : memref<4x1xf32, #tpu.memory_space<vmem>>, vector<4x1xf32>
    %c0_1 = arith.constant 0 : index
    %c0_2 = arith.constant 0 : index
    %c0_3 = arith.constant 0 : index
    %5 = vector.load %arg3[%c0_1, %c0_2, %c0_3] : memref<1x4x256xf32, #tpu.memory_space<vmem>>, vector<1x4x256xf32>
    %6 = vector.shape_cast %5 : vector<1x4x256xf32> to vector<4x256xf32>
    %7 = vector.broadcast %2 : vector<4x1xf32> to vector<4x256xf32>
    %8 = arith.mulf %6, %7 : vector<4x256xf32>
    %9 = vector.broadcast %4 : vector<4x1xf32> to vector<4x256xf32>
    %10 = arith.addf %8, %9 : vector<4x256xf32>
    %c0_4 = arith.constant 0 : index
    %c0_5 = arith.constant 0 : index
    %c0_6 = arith.constant 0 : index
    %11 = vector.load %arg6[%c0_4, %c0_5, %c0_6] : memref<1x4x256xf32, #tpu.memory_space<vmem>>, vector<1x4x256xf32>
    %12 = vector.shape_cast %11 : vector<1x4x256xf32> to vector<4x256xf32>
    %13 = vector.shape_cast %10 : vector<4x256xf32> to vector<1x4x256xf32>
    tpu.vector_store %arg6[%c0_4, %c0_5, %c0_6], %13 {strides = array<i32>} : memref<1x4x256xf32, #tpu.memory_space<vmem>>, vector<1x4x256xf32>,
    return
  }
  func.func @transform_0(%arg0: i32, %arg1: i32, %arg2: i32) -> (i32, i32, i32) {
    %c0_i32 = arith.constant 0 : i32
    return %arg0, %arg1, %arg2 : i32, i32, i32
  }
  func.func @transform_1(%arg0: i32, %arg1: i32, %arg2: i32) -> (i32, i32) {
    %c0_i32 = arith.constant 0 : i32
    %c0_i32_0 = arith.constant 0 : i32
    %c0_i32_1 = arith.constant 0 : i32
    return %c0_i32, %c0_i32_0 : i32, i32
  }
  func.func @transform_2(%arg0: i32, %arg1: i32, %arg2: i32) -> (i32, i32) {
    %c0_i32 = arith.constant 0 : i32
    %c0_i32_0 = arith.constant 0 : i32
    %c0_i32_1 = arith.constant 0 : i32
    return %c0_i32, %c0_i32_0 : i32, i32
  }
  func.func @transform_3(%arg0: i32, %arg1: i32, %arg2: i32) -> (i32, i32, i32) {
    %c0_i32 = arith.constant 0 : i32
    return %arg0, %arg1, %arg2 : i32, i32, i32
  }
}

</mosaic_0001>

<bundles_post_ra>
// kernel: tpu_custom_call.1
= control target key start
LH: loop header
LB: loop body
LE: loop exit
PB: predicated region body
PF: predicated region fallthrough
CT: control target
= control target key end

     0   :  { %8 = vsyncpa [#allocation3], 0  ;;  %s765_s0 = inlined_call_operand.hbm [shape: f32[2,4,256], index: 0, kind: input, shape index: {}]   ;;  %s766_s1 = inlined_call_operand.vmem [shape: f32[4,1], index: 1, kind: input, shape index: {}]   ;;  %s767_s2 = inlined_call_operand.vmem [shape: f32[4,1], index: 2, kind: input, shape index: {}]   ;;  %s768_s3 = inlined_call_operand.hbm [shape: f32[2,4,256], index: 3, kind: output, shape index: {}]  }
   0x1   :  { %10 = vsyncpa [#allocation3 + $0x1], 0 }
   0x2   :  { %11 = vsyncpa [#allocation4], 0 }
   0x3   :  { %13 = vsyncpa [#allocation4 + $0x1], 0  ;;  %s587_s12 = smov 0   ;;  %s589_s13 = smov 0  }
   0x4   :  { %s591_s14 = smov 0   ;;  %s593_s15 = smov 0  }
   0x5   :  { %s595_s16 = smov 0   ;;  %s597_s17 = smov 0  }
   0x6 LB: > { %s367_s18 = sadd.s32 4294967295, %s561_s17   ;;  %s368_s19 = sadd.s32 4294967294, %s561_s17   ;;  %s561_s17 = sphi %s597_s17, %s19_s17   ;;  %s557_s16 = sphi %s595_s16, %s784_s16   ;;  %s553_s15 = sphi %s593_s15, %s783_s15   ;;  %s549_s14 = sphi %s591_s14, %s782_s14   ;;  %s545_s13 = sphi %s589_s13, %s781_s13   ;;  %s541_s12 = sphi %s587_s12, %s780_s12  }
   0x7   : > { %s38_s20 = sadd.s32 1, %s557_s16  ;;  %s49_s21 = sadd.s32 1, %s549_s14 }
   0x8   : > { %p40_p0 = scmp.ge.s32.totalorder %s38_s20, 2  ;;  %p56_p1 = scmp.ne.s32.totalorder %s549_s14, %s545_s13 }
   0x9   : > { %p57_p2 = scmp.eq.s32.totalorder %s561_s17, 0  ;;  %p62_p3 = scmp.ne.s32.totalorder %s545_s13, %s541_s12 }
   0xa   : > { %s786_s20 = smov (%p40_p0, %s38_s20), 0  ;;  %p63_p5 = scmp.eq.s32.totalorder %s367_s18, 0 }
   0xb   : > { %p628_p4 = por %p57_p2, %p56_p1  ;;  %s42_s23 = ssub.s32 %s557_s16, %s786_s20 }
   0xc   : > { %p132_p6 = scmp.eq.s32.totalorder %s367_s18, 1  ;;  %p47_p7 = scmp.eq.s32.totalorder %s42_s23, 0 }
   0xd   : > { %p634_p8 = por %p63_p5, %p62_p3  ;;  %p138_p10 = scmp.eq.s32.totalorder %s368_s19, 1 }
   0xe   : > { %p638_p9 = por %p132_p6, %p56_p1  ;;  %p396_p13 = scmp.lt.s32.totalorder %s561_s17, 2 }
   0xf   : > { %s643_s26 = scalar_select %p47_p7, %s549_s14, %s49_s21  }
  0x10   : > { %s772_s25 = scalar_select %p638_p9, 1, 0 }
  0x11   : > { %p645_p11 = por %p138_p10, %p62_p3  ;;  %s164_s28 = sand.u32 1, %s549_s14  }
  0x12   : > { %s371_s29 = sshll.u32 %s164_s28, 3  ;;  %s382_s30 = sshll.u32 %s557_s16, 7 }
  0x13   : > { %s773_s27 = scalar_select %p645_p11, 1, 0 }
  0x14   : > { %s656_s6 = scalar_lea.hbm %s765_s0, %s382_s30  ;;  %s168_s7 = scalar_lea.vmem [#allocation2], %s371_s29 }
  0x15   : > { %s180_s8 = sshll.u32 %s168_s7, 4  ;;  %p662_p0 = pnand %p396_p13, %p628_p4  ;;  %s658_s8 = int_to_ptr.vmem [resolvable:$true] %s180_s8 }
  0x16   : > { %s165_s10 = scalar_lea.sflag [#allocation3], %s164_s28  ;;  %s449_s11 = scalar_lea.hbm %s656_s6, 128 }
  0x17   : > { %p450_p3 = scmp.ne.s32.totalorder %s656_s6, %s449_s11  ;;  %p451_p5 = pneg %p662_p0 }
  0x18   : > { %s454_s21 = scalar_lea.hbm %s765_s0, 256  ;;  %p455_p4 = scmp.lt.u32.totalorder %s656_s6, %s765_s0 }
  0x19   : > { %p452_p6 = pnand %p451_p5, %p450_p3  ;;  %p456_p10 = scmp.lt.u32.totalorder %s454_s21, %s449_s11 }
  0x1a   : > { %p458_p12 = scmp.lt.u32.totalorder %s449_s11, %s656_s6 }
  0x1b   : > { %p453_p7 = pneg %p452_p6  ;;  %p457_p13 = por %p456_p10, %p455_p4 }
  0x1d   : > { %p459_p1 = por %p458_p12, %p457_p13 }
  0x1f   : > { %p460_p2 = pnand %p459_p1, %p453_p7 }
  0x21   : > { %463 = shalt.err (!%p460_p2)
}
  0x22   : > { %s464_s28 = scalar_lea.vmem %s658_s8, 128  ;;  %s563_s29 = smov [#allocation2]  }
  0x23   : > { %p465_p3 = scmp.ne.s32.totalorder %s658_s8, %s464_s28  ;;  %s469_s30 = sshll.u32 %s563_s29, 4  ;;  %s470_s30 = int_to_ptr.vmem [resolvable:$false] %s469_s30 }
  0x24   : > { %s471_s4 = scalar_lea.vmem %s470_s30, 256  ;;  %p472_p9 = scmp.lt.s32.totalorder %s658_s8, %s470_s30 }
  0x25   : > { %p467_p6 = pnand %p465_p3, %p451_p5  ;;  %p473_p4 = scmp.lt.s32.totalorder %s471_s4, %s464_s28 }
  0x27   : > { %p468_p11 = pneg %p467_p6  ;;  %p474_p10 = por %p473_p4, %p472_p9 }
  0x29   : > { %p475_p12 = pnand %p474_p10, %p468_p11 }
  0x2b   : > { %478 = shalt.err (!%p475_p12)
}
  0x2c   : > { %391 = dma.hbm_to_vmem [thread:$0]  (!%p662_p0), %s656_s6, 128, %s658_s8, %s165_s10  }
  0x2d   : > { %p775_p1 = scmp.lt.s32.totalorder %s561_s17, 3  ;;  %p776_p2 = scmp.ge.s32.totalorder %s561_s17, 1 }
  0x2f   : > { %p186_p5 = pnand %p776_p2, %p775_p1 }
  0x30   : > { %s698_s5 = sand.u32 (!%p186_p5), 1, %s545_s13  }
  0x31   : > { %189 = sbr.rel (%p186_p5) target bundleno = 209 (0xd1), region = 32  ;;  %s375_s7 = sshll.u32 (!%p186_p5), %s698_s5, 3 }
  0x32   : > { %s192_s11 = scalar_lea.sflag (!%p186_p5), [#allocation3], %s698_s5  ;;  %s195_s18 = scalar_lea.vmem (!%p186_p5), [#allocation2], %s375_s7 }
  0x38   : > { %532 = dma.done.wait (%p634_p8), %s192_s11, 128  }
  0x39   : > { %534 = vsyncadd (%p634_p8), %s192_s11, 4294967168  ;;  %v564_v0 = vmov 0   ;;  %v222_v1 = vld [vmem:[%s766_s1] sm:$0xf]  ;;  %v565_v3 = vmov 839922192   ;;  %v233_v5 = vlaneseq }
  0x3a   : > { %448 = vset.pattern.permute.xlu0 %v564_v0  ;;  %v224_v2 = vld [vmem:[%s767_s2] sm:$0xf]  ;;  %v231_v4 = vunpack.c.l.s4 %v565_v3  ;;  %s383_s24 = sshll.u32 %s553_s15, 7  ;;  %s217_s19 = scalar_lea.vmem [#allocation5], %s375_s7 }
  0x3b   : > { %228 = vperm.xlu0 %448, %v222_v1   ;;  %v234_v7 = vshrl.u32 %v233_v5, 7  ;;  %v225_v11 = vld [vmem:[%s195_s18] sm:$0xff]  ;;  %s272_s21 = sshll.u32 %s217_s19, 4  ;;  %s716_s28 = scalar_lea.hbm %s768_s3, %s383_s24  ;;  %s718_s21 = int_to_ptr.vmem [resolvable:$true] %s272_s21 }
  0x3c   : > { %v232_v6 = vunpack.c.0.s8 %v231_v4  ;;  %s254_s29 = scalar_lea.sflag [#allocation4], %s698_s5  ;;  %s479_s30 = scalar_lea.vmem %s718_s21, 128 }
  0x3d   : > { %p480_p8 = scmp.ne.s32.totalorder %s718_s21, %s479_s30  ;;  %p777_p9 = scmp.ne.s32.totalorder %s772_s25, 0 }
  0x3e   : > { %v235_v8 = vsub.s32 %v232_v6, %v234_v7  ;;  %s566_s15 = smov [#allocation5]  }
  0x3f   : > { %241 = vperm.xlu0 %448, %v224_v2   ;;  %p481_p11 = pnand %p480_p8, %p777_p9  ;;  %s483_s4 = sshll.u32 %s566_s15, 4  ;;  %s484_s4 = int_to_ptr.vmem [resolvable:$false] %s483_s4 }
  0x40   : > { %s485_s7 = scalar_lea.vmem %s484_s4, 256  ;;  %p486_p7 = scmp.lt.s32.totalorder %s718_s21, %s484_s4 }
  0x41   : > { %p482_p0 = pneg %p481_p11  ;;  %p487_p13 = scmp.lt.s32.totalorder %s485_s7, %s479_s30 }
  0x43   : > { %p488_p3 = por %p487_p13, %p486_p7 }
  0x45   : > { %p489_p6 = pnand %p488_p3, %p482_p0 }
  0xba   : > { %v229_v9 = vpop.permute.xlu0 %228 }
  0xbb   : > { %v236_v10 = vrot.slane %v229_v9, %v235_v8 }
  0xbd   : > { %v238_v13 = vmul.f32 %v236_v10, %v225_v11 }
  0xbe   : > { %v242_v12 = vpop.permute.xlu0 %241 }
  0xbf   : > { %v249_v14 = vrot.slane %v242_v12, %v235_v8 }
  0xc1   : > { %v251_v15 = vadd.f32 %v249_v14, %v238_v13 }
  0xc3   : > { %252 = vst [vmem:[%s217_s19] sm:$0xff] %v251_v15 }
  0xc4   : > { %492 = shalt.err (!%p489_p6)
}
  0xc5   : > { %s493_s5 = scalar_lea.hbm %s716_s28, 128  ;;  %s497_s6 = scalar_lea.hbm %s768_s3, 256 }
  0xc6   : > { %p494_p4 = scmp.ne.s32.totalorder %s716_s28, %s493_s5  ;;  %p498_p1 = scmp.lt.u32.totalorder %s716_s28, %s768_s3 }
  0xc7   : > { %p499_p2 = scmp.lt.u32.totalorder %s497_s6, %s493_s5  ;;  %p501_p8 = scmp.lt.u32.totalorder %s493_s5, %s716_s28 }
  0xc8   : > { %p495_p10 = pnand %p494_p4, %p777_p9 }
  0xc9   : > { %p500_p5 = por %p499_p2, %p498_p1 }
  0xca   : > { %p496_p12 = pneg %p495_p10 }
  0xcb   : > { %p502_p11 = por %p501_p8, %p500_p5 }
  0xcd   : > { %p503_p0 = pnand %p502_p11, %p496_p12 }
  0xcf   : > { %506 = shalt.err (!%p503_p0)
}
  0xd0   : > { %386 = dma.vmem_to_hbm [thread:$0]  (%p777_p9), %s718_s21, 128, %s716_s28, %s254_s29  }
  0xd1 PF: > { %s284_s10 = sand.u32 1, %s541_s12   ;;  %p778_p7 = scmp.ne.s32.totalorder %s773_s27, 0 }
  0xd2   : > { %p779_p13 = scmp.ge.s32.totalorder %s561_s17, 2  ;;  %s285_s24 = scalar_lea.sflag [#allocation4], %s284_s10 }
  0xd4   : > { %p393_p3 = pnand %p779_p13, %p778_p7 }
  0xd6   : > { %536 = dma.done.wait (!%p393_p3), %s285_s24, 128  }
  0xd7   : > { %538 = vsyncadd (!%p393_p3), %s285_s24, 4294967168  ;;  %s19_s17 = sadd.s32 1, %s561_s17   ;;  %s780_s12 = smov %s545_s13 }
  0xd8   : > { %p16_p6 = scmp.ge.s32.totalorder %s19_s17, 4   ;;  %s781_s13 = smov %s549_s14 }
  0xd9   : > { %s782_s14 = smov %s643_s26  ;;  %s783_s15 = smov %s557_s16 }
  0xda   : > { %s784_s16 = smov %s786_s20  ;;  %18 = sbr.rel (!%p16_p6) target bundleno = 6 (0x6), region = 79 }
  0xe1   :  { %290 = vsyncpa [#allocation3], 1 }
  0xe2   :  { %292 = vsyncpa [#allocation3 + $0x1], 1 }
  0xe3   :  { %293 = vsyncpa [#allocation4], 1 }
  0xe4   :  { %295 = vsyncpa [#allocation4 + $0x1], 1 }

</bundles_post_ra>
